<compile_context>
chip_gen: v7x
topology: tpu7x:2x2x1
jax: 0.10.0
libtpu: 0.0.40
codegen_flags: <defaults>
</compile_context>

<pallas_src>
import functools

import jax
import jax.numpy as jnp
from jax.experimental import pallas as pl
from jax.experimental.pallas import tpu as pltpu

BATCH_TILE = 128                 # LSTM batch tile (rows per grid step)
TIME_CHUNK = 8                   # LSTM unrolled steps per grid step (tunable)
VMEM_LIMIT = 48 * 1024 * 1024    # < v7x 64 MiB physical per-TC VMEM


def _round_up(x, m):
    return (x + m - 1) // m * m


def _pick_time_chunk(seq, target):
    """Largest multiple-of-8 divisor of seq that is <= target; else whole seq."""
    for d in range(min(target, seq), 7, -1):
        if seq % d == 0 and d % 8 == 0:
            return d
    return seq   # whole sequence resident; block dim == full dim is legal


# ----------------------------------------------------------------------------
# Shared tiled matmul + bias kernel:  (M, K) @ (K, N) + (1, N) -> (M, N)
# Used for the hoisted LSTM input projection (bf16 output) and the decoder.
# bf16 operands on the MXU, f32 accumulation, bias folded in f32.
# ----------------------------------------------------------------------------
def _matmul_bias_kernel(x_ref, w_ref, b_ref, o_ref):
    acc = jnp.dot(x_ref[...].astype(jnp.bfloat16),
                  w_ref[...].astype(jnp.bfloat16),
                  preferred_element_type=jnp.float32)
    o_ref[...] = (acc + b_ref[...]).astype(o_ref.dtype)


def matmul_bias(x, w, b, *, tm=256, tn=512, out_dtype=jnp.float32):
    """x: (M, K); w: (K, N); b: (1, N).  K stays fully resident (small)."""
    M, K = x.shape
    N = w.shape[1]
    tm = min(tm, M)
    tn = min(tn, N)
    return pl.pallas_call(
        _matmul_bias_kernel,
        out_shape=jax.ShapeDtypeStruct((M, N), out_dtype),
        grid=(pl.cdiv(M, tm), pl.cdiv(N, tn)),
        in_specs=[
            pl.BlockSpec((tm, K), lambda i, j: (i, 0)),
            pl.BlockSpec((K, tn), lambda i, j: (0, j)),
            pl.BlockSpec((1, tn), lambda i, j: (0, j)),
        ],
        out_specs=pl.BlockSpec((tm, tn), lambda i, j: (i, j)),
        compiler_params=pltpu.CompilerParams(
            dimension_semantics=("parallel", "parallel"),
            vmem_limit_bytes=VMEM_LIMIT),
    )(x, w, b)


# ----------------------------------------------------------------------------
# LSTM recurrence kernel.
#   grid = (batch tiles [parallel], time chunks [arbitrary])
#   gx   : (seq, Bp, 4Hp) bf16, precomputed input gates (time-major in HBM)
#   hs   : (Bp, seq, Hp)  bf16, written batch-major (free reshape for decoder)
#   h/c  : carried across time chunks in VMEM scratch (f32).
# Only h @ W_hh + elementwise gate math sits on the serial critical path.
# ----------------------------------------------------------------------------
def _lstm_kernel(gx_ref, whh_ref, h0_ref, c0_ref,
                 hs_ref, hN_ref, cN_ref, h_sc, c_sc, *, t_chunk, hidden_pad):
    H = hidden_pad
    tc = pl.program_id(1)

    @pl.when(tc == 0)
    def _():                                   # fresh batch tile: load initial state
        h_sc[...] = h0_ref[...]
        c_sc[...] = c0_ref[...]

    h = h_sc[...]                              # (bt, Hp) f32
    c = c_sc[...]

    # Static (fully unrolled) loop over the chunk: all gx loads / hs stores use
    # static indices; the outer time-chunk grid axis bounds live ranges.
    for t in range(t_chunk):
        gates = gx_ref[t].astype(jnp.float32) + jnp.dot(
            h.astype(jnp.bfloat16), whh_ref[...],      # RHS streamed from VMEM
            preferred_element_type=jnp.float32)
        # Gate order i, f, g, o; slices are 128-lane aligned (Hp % 128 == 0).
        i_g = jax.nn.sigmoid(gates[:, 0 * H:1 * H])
        f_g = jax.nn.sigmoid(gates[:, 1 * H:2 * H])
        g_g = jnp.tanh(gates[:, 2 * H:3 * H])
        o_g = jax.nn.sigmoid(gates[:, 3 * H:4 * H])
        c = f_g * c + i_g * g_g
        h = o_g * jnp.tanh(c)
        hs_ref[:, t, :] = h.astype(hs_ref.dtype)       # batch-major, static index

    h_sc[...] = h                              # carry to the next chunk
    c_sc[...] = c

    @pl.when(tc == pl.num_programs(1) - 1)
    def _():                                   # final state written once
        hN_ref[...] = h
        cN_ref[...] = c


def lstm_forward(gx, w_hh_t, h0, c0, *, batch_tile=BATCH_TILE,
                 time_chunk=TIME_CHUNK):
    """gx: (seq, Bp, 4*Hp) bf16; w_hh_t: (Hp, 4*Hp) bf16; h0, c0: (Bp, Hp) f32.
    Returns hs (Bp, seq, Hp) bf16 (batch-major), h_n, c_n (Bp, Hp) f32."""
    seq, Bp, G = gx.shape
    Hp = G // 4
    bt = min(batch_tile, Bp)
    if Bp % bt:
        raise ValueError(f"batch pad {Bp} must be a multiple of batch tile {bt}")
    t_chunk = _pick_time_chunk(seq, time_chunk)
    kernel = functools.partial(_lstm_kernel, t_chunk=t_chunk, hidden_pad=Hp)

    return pl.pallas_call(
        kernel,
        out_shape=(
            jax.ShapeDtypeStruct((Bp, seq, Hp), jnp.bfloat16),   # hs (batch-major)
            jax.ShapeDtypeStruct((Bp, Hp), jnp.float32),         # final h
            jax.ShapeDtypeStruct((Bp, Hp), jnp.float32),         # final c
        ),
        grid=(pl.cdiv(Bp, bt), pl.cdiv(seq, t_chunk)),
        in_specs=[
            pl.BlockSpec((t_chunk, bt, G), lambda b, t: (t, b, 0)),   # gx chunk
            pl.BlockSpec((Hp, G), lambda b, t: (0, 0)),               # W_hh^T
            pl.BlockSpec((bt, Hp), lambda b, t: (b, 0)),              # h0
            pl.BlockSpec((bt, Hp), lambda b, t: (b, 0)),              # c0
        ],
        out_specs=(
            pl.BlockSpec((bt, t_chunk, Hp), lambda b, t: (b, t, 0)),
            pl.BlockSpec((bt, Hp), lambda b, t: (b, 0)),
            pl.BlockSpec((bt, Hp), lambda b, t: (b, 0)),
        ),
        scratch_shapes=[pltpu.VMEM((bt, Hp), jnp.float32),            # h carry
                        pltpu.VMEM((bt, Hp), jnp.float32)],           # c carry
        compiler_params=pltpu.CompilerParams(
            dimension_semantics=("parallel", "arbitrary"),
            vmem_limit_bytes=VMEM_LIMIT),
    )(gx, w_hh_t, h0, c0)


# ----------------------------------------------------------------------------
# CharRNN forward (mirrors the PyTorch module)
# ----------------------------------------------------------------------------
def char_rnn_forward(params, tokens, hidden):
    """tokens: (batch, seq) int32; hidden = (h0, c0) each (n_layers=1, batch, H)."""
    h0, c0 = hidden
    B, seq = tokens.shape
    meta = params["meta"]
    H, V = meta["H"], meta["V"]
    Hp, Ep, Vp = meta["Hp"], meta["Ep"], meta["Vp"]
    # >= 8 sublanes; once batch exceeds one tile, round to the tile so the
    # LSTM batch grid divides exactly.
    Bp = _round_up(B, 8) if B <= BATCH_TILE else _round_up(B, BATCH_TILE)

    # 1) Embedding lookup, gathered directly time-major: pad/transpose only the
    #    tiny int32 token matrix, never the embedded tensor.
    # TODO(synk): the data-dependent gather stays in XLA; a DMA-gather Pallas
    # kernel would be needed to move it on-chip.
    tok_p = jnp.pad(tokens, ((0, Bp - B), (0, 0)))           # (Bp, seq) int32
    enc_t = params["emb"][tok_p.T]                           # (seq, Bp, Ep) f32
    x_flat = enc_t.reshape(seq * Bp, Ep).astype(jnp.bfloat16)

    # 2) Hoisted input projection: one big MXU matmul, bf16 output (largest
    #    tensor in the model -> half the HBM traffic and LSTM VMEM).
    gx = matmul_bias(x_flat, params["w_ih_t"], params["lstm_b"],
                     out_dtype=jnp.bfloat16)
    gx = gx.reshape(seq, Bp, 4 * Hp)

    # 3) LSTM recurrence (time-chunked, batch-parallel); hs is batch-major.
    h0p = jnp.zeros((Bp, Hp), jnp.float32).at[:B, :H].set(h0[0])
    c0p = jnp.zeros((Bp, Hp), jnp.float32).at[:B, :H].set(c0[0])
    hs, h_n, c_n = lstm_forward(gx, params["w_hh_t"], h0p, c0p)

    # 4) Decoder: hs is already batch-major, so the PyTorch
    #    output.permute(1,0,2).view(-1, H) is a free reshape here.
    logits_p = matmul_bias(hs.reshape(Bp * seq, Hp),
                           params["dec_w_t"], params["dec_b"])
    logits = logits_p.reshape(Bp, seq, Vp)[:B, :, :V].reshape(B * seq, V)

    return logits, (h_n[:B, :H][None], c_n[:B, :H][None])


def init_params(key, hidden_size, embedding_dim, output_size):
    H, E, V = hidden_size, embedding_dim, output_size
    Hp, Ep, Vp = _round_up(H, 128), _round_up(E, 128), _round_up(V, 128)
    k = jax.random.split(key, 7)

    # Embedding: xavier_uniform over (V, E); zero-pad the feature (lane) dim.
    limit_e = jnp.sqrt(6.0 / (V + E))
    emb = jax.random.uniform(k[0], (V, E), jnp.float32, -limit_e, limit_e)
    emb_p = jnp.zeros((V, Ep), jnp.float32).at[:, :E].set(emb)

    # LSTM: PyTorch default uniform(-1/sqrt(H), 1/sqrt(H)); gate order i,f,g,o.
    s = 1.0 / jnp.sqrt(hidden_size)
    w_ih = jax.random.uniform(k[1], (4 * H, E), jnp.float32, -s, s)
    w_hh = jax.random.uniform(k[2], (4 * H, H), jnp.float32, -s, s)
    b_ih = jax.random.uniform(k[3], (4 * H,), jnp.float32, -s, s)
    b_hh = jax.random.uniform(k[4], (4 * H,), jnp.float32, -s, s)

    # Lay each gate on a 128-aligned slab of the padded 4*Hp gate axis so the
    # in-kernel gate slices are lane-tile aligned.  Padded rows/cols are zero,
    # so padded lanes of h/c stay exactly zero through the recurrence.
    w_ih_t = jnp.zeros((Ep, 4 * Hp), jnp.float32)
    w_hh_t = jnp.zeros((Hp, 4 * Hp), jnp.float32)
    lstm_b = jnp.zeros((1, 4 * Hp), jnp.float32)
    for g in range(4):
        w_ih_t = w_ih_t.at[:E, g * Hp:g * Hp + H].set(w_ih[g * H:(g + 1) * H, :].T)
        w_hh_t = w_hh_t.at[:H, g * Hp:g * Hp + H].set(w_hh[g * H:(g + 1) * H, :].T)
        lstm_b = lstm_b.at[0, g * Hp:g * Hp + H].set(
            b_ih[g * H:(g + 1) * H] + b_hh[g * H:(g + 1) * H])

    # Decoder Linear: uniform(-1/sqrt(H), 1/sqrt(H)); pad H (rows) and V (lanes).
    dec_w = jax.random.uniform(k[5], (V, H), jnp.float32, -s, s)
    dec_b = jax.random.uniform(k[6], (V,), jnp.float32, -s, s)
    dec_w_t = jnp.zeros((Hp, Vp), jnp.float32).at[:H, :V].set(dec_w.T)
    dec_b_p = jnp.zeros((1, Vp), jnp.float32).at[0, :V].set(dec_b)

    return {
        "emb": emb_p,                                  # (V, Ep)    f32
        "w_ih_t": w_ih_t.astype(jnp.bfloat16),         # (Ep, 4Hp)  bf16
        "w_hh_t": w_hh_t.astype(jnp.bfloat16),         # (Hp, 4Hp)  bf16
        "lstm_b": lstm_b,                              # (1, 4Hp)   f32 (b_ih + b_hh)
        "dec_w_t": dec_w_t.astype(jnp.bfloat16),       # (Hp, Vp)   bf16
        "dec_b": dec_b_p,                              # (1, Vp)    f32
        "meta": {"H": H, "E": E, "V": V, "Hp": Hp, "Ep": Ep, "Vp": Vp},
    }


if __name__ == "__main__":
    hidden_size, embedding_dim, output_size, n_layers = 32, 16, 64, 1
    batch, seq = 2, 8

    key = jax.random.PRNGKey(0)
    pkey, tkey = jax.random.split(key)
    params = init_params(pkey, hidden_size, embedding_dim, output_size)

    tokens = jax.random.randint(tkey, (batch, seq), 0, output_size, dtype=jnp.int32)
    h0 = jnp.zeros((n_layers, batch, hidden_size), jnp.float32)
    c0 = jnp.zeros((n_layers, batch, hidden_size), jnp.float32)

    logits, (h_n, c_n) = char_rnn_forward(params, tokens, (h0, c0))
    jax.block_until_ready((logits, h_n, c_n))

    assert logits.shape == (batch * seq, output_size)
    assert h_n.shape == (n_layers, batch, hidden_size)
    assert c_n.shape == (n_layers, batch, hidden_size)
    print("KERNEL_OK")
</pallas_src>

<mosaic_0001>
module attributes {stable_mosaic.version = 11 : i64} {
  func.func @_matmul_bias_kernel(%arg0: i32, %arg1: i32, %arg2: memref<64x128xbf16, #tpu.memory_space<vmem>>, %arg3: memref<128x512xbf16, #tpu.memory_space<vmem>>, %arg4: memref<1x512xf32, #tpu.memory_space<vmem>>, %arg5: memref<64x512xbf16, #tpu.memory_space<vmem>>) attributes {dimension_semantics = [#tpu.dimension_semantics<parallel>, #tpu.dimension_semantics<parallel>], iteration_bounds = array<i64: 1, 1>, scalar_prefetch = 0 : i64, scratch_operands = 0 : i64, tpu.core_type = #tpu.core_type<tc>, window_params = [{transform_indices = @transform_0, window_bounds = array<i64: 64, 128>}, {transform_indices = @transform_1, window_bounds = array<i64: 128, 512>}, {transform_indices = @transform_2, window_bounds = array<i64: 1, 512>}, {transform_indices = @transform_3, window_bounds = array<i64: 64, 512>}]} {
    %c0 = arith.constant 0 : index
    %c0_0 = arith.constant 0 : index
    %0 = vector.load %arg2[%c0, %c0_0] : memref<64x128xbf16, #tpu.memory_space<vmem>>, vector<64x128xbf16>
    %c0_1 = arith.constant 0 : index
    %c0_2 = arith.constant 0 : index
    %1 = vector.load %arg3[%c0_1, %c0_2] : memref<128x512xbf16, #tpu.memory_space<vmem>>, vector<128x512xbf16>
    %cst = arith.constant dense<0.000000e+00> : vector<64x512xf32>
    %2 = tpu.matmul %0, %1, %cst {dimension_numbers = #tpu.dot_dimension_numbers<[1], [0], [0], [1], [0, 0, 1, 1], [], []>} : vector<64x128xbf16>, vector<128x512xbf16>, vector<64x512xf32> -> vector<64x512xf32>
    %c0_3 = arith.constant 0 : index
    %c0_4 = arith.constant 0 : index
    %3 = vector.load %arg4[%c0_3, %c0_4] : memref<1x512xf32, #tpu.memory_space<vmem>>, vector<1x512xf32>
    %4 = vector.broadcast %3 : vector<1x512xf32> to vector<64x512xf32>
    %5 = arith.addf %2, %4 : vector<64x512xf32>
    %6 = arith.truncf %5 : vector<64x512xf32> to vector<64x512xbf16>
    %c0_5 = arith.constant 0 : index
    %c0_6 = arith.constant 0 : index
    %7 = vector.load %arg5[%c0_5, %c0_6] : memref<64x512xbf16, #tpu.memory_space<vmem>>, vector<64x512xbf16>
    tpu.vector_store %arg5[%c0_5, %c0_6], %6 {strides = array<i32>} : memref<64x512xbf16, #tpu.memory_space<vmem>>, vector<64x512xbf16>,
    return
  }
  func.func @transform_0(%arg0: i32, %arg1: i32) -> (i32, i32) {
    %c0_i32 = arith.constant 0 : i32
    %c0_i32_0 = arith.constant 0 : i32
    return %arg0, %c0_i32 : i32, i32
  }
  func.func @transform_1(%arg0: i32, %arg1: i32) -> (i32, i32) {
    %c0_i32 = arith.constant 0 : i32
    %c0_i32_0 = arith.constant 0 : i32
    return %c0_i32, %arg1 : i32, i32
  }
  func.func @transform_2(%arg0: i32, %arg1: i32) -> (i32, i32) {
    %c0_i32 = arith.constant 0 : i32
    %c0_i32_0 = arith.constant 0 : i32
    return %c0_i32, %arg1 : i32, i32
  }
  func.func @transform_3(%arg0: i32, %arg1: i32) -> (i32, i32) {
    %c0_i32 = arith.constant 0 : i32
    return %arg0, %arg1 : i32, i32
  }
}

</mosaic_0001>

<bundles_post_ra>
// kernel: tpu_custom_call.1
= control target key start
LH: loop header
LB: loop body
LE: loop exit
PB: predicated region body
PF: predicated region fallthrough
CT: control target
= control target key end

     0   :  { %8 = vsyncpa [#allocation3], 0  ;;  %s887_s0 = inlined_call_operand.hbm [shape: bf16[64,128], index: 0, kind: input, shape index: {}]   ;;  %s888_s1 = inlined_call_operand.hbm [shape: bf16[128,512], index: 1, kind: input, shape index: {}]   ;;  %s889_s2 = inlined_call_operand.vmem [shape: f32[1,512], index: 2, kind: input, shape index: {}]   ;;  %s890_s3 = inlined_call_operand.hbm [shape: bf16[64,512], index: 3, kind: output, shape index: {}]  }
   0x1   :  { %9 = vsyncpa [#allocation6], 0 }
   0x2   :  { %10 = vsyncpa [#allocation4], 0  ;;  %s766_s12 = smov [#allocation2]   ;;  %s694_s16 = scalar_lea.hbm %s887_s0, 512 }
   0x3   :  { %s16_s13 = sshll.u32 %s766_s12, 4  ;;  %p695_p0 = scmp.ne.s32.totalorder %s887_s0, %s694_s16  ;;  %s17_s13 = int_to_ptr.vmem [resolvable:$true] %s16_s13 }
   0x4   :  { %p698_p1 = scmp.lt.u32.totalorder %s694_s16, %s887_s0 }
   0x6   :  { %p700_p2 = pnand %p698_p1, %p695_p0 }
   0x8   :  { %703 = shalt.err (!%p700_p2)
}
   0x9   :  { %s704_s21 = scalar_lea.vmem %s17_s13, 512  ;;  %p709_p4 = scmp.lt.s32.totalorder %s17_s13, %s17_s13 }
   0xa   :  { %p705_p3 = scmp.ne.s32.totalorder %s17_s13, %s704_s21  ;;  %p710_p5 = scmp.lt.s32.totalorder %s704_s21, %s704_s21 }
   0xc   :  { %p711_p6 = por %p710_p5, %p709_p4 }
   0xe   :  { %p712_p7 = pnand %p711_p6, %p705_p3 }
  0x10   :  { %715 = shalt.err (!%p712_p7)
}
  0x11   :  { %s767_s22 = smov 64   ;;  %s768_s23 = smov 4  }
  0x12   :  { %22 = dma.hbm_to_vmem [thread:$0]  %s887_s0, 512, %s17_s13, [#allocation3], %s767_s22, %s767_s22, %s768_s23  }
  0x13   :  { %s769_s26 = smov [#allocation5]   ;;  %s716_s30 = scalar_lea.hbm %s888_s1, 4096 }
  0x14   :  { %s28_s27 = sshll.u32 %s769_s26, 4  ;;  %p717_p8 = scmp.ne.s32.totalorder %s888_s1, %s716_s30  ;;  %s29_s27 = int_to_ptr.vmem [resolvable:$true] %s28_s27 }
  0x15   :  { %p720_p9 = scmp.lt.u32.totalorder %s716_s30, %s888_s1 }
  0x17   :  { %p722_p10 = pnand %p720_p9, %p717_p8 }
  0x19   :  { %725 = shalt.err (!%p722_p10)
}
  0x1a   :  { %s726_s8 = scalar_lea.vmem %s29_s27, 4096  ;;  %p731_p12 = scmp.lt.s32.totalorder %s29_s27, %s29_s27 }
  0x1b   :  { %p727_p11 = scmp.ne.s32.totalorder %s29_s27, %s726_s8  ;;  %p732_p13 = scmp.lt.s32.totalorder %s726_s8, %s726_s8 }
  0x1d   :  { %p733_p0 = por %p732_p13, %p731_p12 }
  0x1f   :  { %p734_p1 = pnand %p733_p0, %p727_p11 }
  0x21   :  { %737 = shalt.err (!%p734_p1)
}
  0x22   :  { %s770_s0 = smov 256   ;;  %s771_s9 = smov 16  }
  0x23   :  { %34 = dma.hbm_to_vmem [thread:$0]  %s888_s1, 4096, %s29_s27, [#allocation6], %s770_s0, %s770_s0, %s771_s9  }
  0x24   :  { %760 = dma.done.wait [#allocation3], 512  }
  0x25   :  { %761 = vsyncadd [#allocation3], 4294966784 }
  0x26   :  { %762 = dma.done.wait [#allocation6], 4096  }
  0x27   :  { %763 = vsyncadd [#allocation6], 4294963200  ;;  %v772_v0 = vmov 0   ;;  %v642_v1 = vld [vmem:[#allocation5 + $0x4] ss:$16 sps:$4 sm:$0xff]   ;;  %v691_v34 = vld [vmem:[#allocation2 + $0x8] sm:$0xff]   ;;  %v86_v37 = vlaneseq }
  0x28   :  { %322 = vmatprep.mubr.bf16.mxu0 %v772_v0  ;;  %395 = vmatprep.mubr.bf16.mxu1 %v772_v0  ;;  %v644_v2 = vld [vmem:[#allocation5 + $0xc] ss:$16 sps:$4 sm:$0xff]   ;;  %v646_v3 = vld [vmem:[#allocation5] ss:$16 sps:$4 sm:$0xff]   ;;  %v647_v4 = vld [vmem:[#allocation5 + $0x8] ss:$16 sps:$4 sm:$0xff]  }
  0x29   :  { %290 = vmatprep.subr.bf16.mxu0 %v642_v1  ;;  %363 = vmatprep.subr.bf16.mxu1 %v644_v2  ;;  %v648_v5 = vld [vmem:[#allocation5 + $0x24] ss:$16 sps:$4 sm:$0xff]   ;;  %v650_v6 = vld [vmem:[#allocation5 + $0x2c] ss:$16 sps:$4 sm:$0xff]   ;;  %v652_v7 = vld [vmem:[#allocation5 + $0x20] ss:$16 sps:$4 sm:$0xff]  }
  0x2a   :  { %291 = vmatpush1.bf16.msra.mxu0 %v646_v3  ;;  %364 = vmatpush1.bf16.msra.mxu1 %v647_v4  ;;  %v653_v8 = vld [vmem:[#allocation5 + $0x28] ss:$16 sps:$4 sm:$0xff]   ;;  %v654_v9 = vld [vmem:[#allocation5 + $0x44] ss:$16 sps:$4 sm:$0xff]   ;;  %v656_v10 = vld [vmem:[#allocation5 + $0x4c] ss:$16 sps:$4 sm:$0xff]  }
  0x2b   :  { %292 = vmatprep.subr.bf16.mxu0 %v648_v5  ;;  %365 = vmatprep.subr.bf16.mxu1 %v650_v6  ;;  %v658_v11 = vld [vmem:[#allocation5 + $0x40] ss:$16 sps:$4 sm:$0xff]   ;;  %v659_v12 = vld [vmem:[#allocation5 + $0x48] ss:$16 sps:$4 sm:$0xff]   ;;  %v660_v13 = vld [vmem:[#allocation5 + $0x64] ss:$16 sps:$4 sm:$0xff]  }
  0x2c   :  { %v662_v14 = vld [vmem:[#allocation5 + $0x6c] ss:$16 sps:$4 sm:$0xff]   ;;  %v664_v15 = vld [vmem:[#allocation5 + $0x60] ss:$16 sps:$4 sm:$0xff]   ;;  %v665_v16 = vld [vmem:[#allocation5 + $0x68] ss:$16 sps:$4 sm:$0xff]  }
  0x2d   :  { %v666_v17 = vld [vmem:[#allocation5 + $0x84] ss:$16 sps:$4 sm:$0xff]   ;;  %v668_v18 = vld [vmem:[#allocation5 + $0x8c] ss:$16 sps:$4 sm:$0xff]   ;;  %v670_v19 = vld [vmem:[#allocation5 + $0x80] ss:$16 sps:$4 sm:$0xff]  }
  0x2e   :  { %293 = vmatpush1.bf16.msra.mxu0 %v652_v7  ;;  %366 = vmatpush1.bf16.msra.mxu1 %v653_v8  ;;  %v671_v20 = vld [vmem:[#allocation5 + $0x88] ss:$16 sps:$4 sm:$0xff]   ;;  %v672_v21 = vld [vmem:[#allocation5 + $0xa4] ss:$16 sps:$4 sm:$0xff]   ;;  %v674_v22 = vld [vmem:[#allocation5 + $0xac] ss:$16 sps:$4 sm:$0xff]  }
  0x2f   :  { %294 = vmatprep.subr.bf16.mxu0 %v654_v9  ;;  %367 = vmatprep.subr.bf16.mxu1 %v656_v10  ;;  %v676_v23 = vld [vmem:[#allocation5 + $0xa0] ss:$16 sps:$4 sm:$0xff]   ;;  %v677_v24 = vld [vmem:[#allocation5 + $0xa8] ss:$16 sps:$4 sm:$0xff]   ;;  %v678_v25 = vld [vmem:[#allocation5 + $0xc4] ss:$16 sps:$4 sm:$0xff]  }
  0x30   :  { %v680_v26 = vld [vmem:[#allocation5 + $0xcc] ss:$16 sps:$4 sm:$0xff]   ;;  %v682_v27 = vld [vmem:[#allocation5 + $0xc0] ss:$16 sps:$4 sm:$0xff]   ;;  %v683_v28 = vld [vmem:[#allocation5 + $0xc8] ss:$16 sps:$4 sm:$0xff]  }
  0x31   :  { %v684_v29 = vld [vmem:[#allocation5 + $0xe4] ss:$16 sps:$4 sm:$0xff]   ;;  %v686_v30 = vld [vmem:[#allocation5 + $0xec] ss:$16 sps:$4 sm:$0xff]   ;;  %v688_v31 = vld [vmem:[#allocation5 + $0xe0] ss:$16 sps:$4 sm:$0xff]  }
  0x32   :  { %295 = vmatpush1.bf16.msra.mxu0 %v658_v11  ;;  %368 = vmatpush1.bf16.msra.mxu1 %v659_v12  ;;  %v689_v32 = vld [vmem:[#allocation5 + $0xe8] ss:$16 sps:$4 sm:$0xff]   ;;  %v690_v33 = vld [vmem:[#allocation2] sm:$0xff]   ;;  %v692_v35 = vld [vmem:[#allocation2 + $0x10] sm:$0xff]   ;;  %v87_v38 = vshrl.u32 %v86_v37, 7 }
  0x33   :  { %296 = vmatprep.subr.bf16.mxu0 %v660_v13  ;;  %369 = vmatprep.subr.bf16.mxu1 %v662_v14  ;;  %v693_v36 = vld [vmem:[#allocation2 + $0x18] sm:$0xff]   ;;  %v84_v41 = vld [vmem:[%s889_s2] sm:$0xf]  ;;  %s773_s2 = smov [#allocation7]  }
  0x34   :  { %v88_v39 = vsub.s32 0, %v87_v38  ;;  %v96_v40 = vsub.s32 2, %v87_v38  ;;  %v92_v42 = vsub.s32 1, %v87_v38  ;;  %v100_v43 = vsub.s32 3, %v87_v38  ;;  %s553_s13 = sshll.u32 %s773_s2, 4  ;;  %s554_s13 = int_to_ptr.vmem [resolvable:$true] %s553_s13 }
  0x35   :  { %s738_s14 = scalar_lea.vmem %s554_s13, 2048  ;;  %p743_p3 = scmp.lt.s32.totalorder %s554_s13, %s554_s13 }
  0x36   :  { %297 = vmatpush1.bf16.msra.mxu0 %v664_v15  ;;  %370 = vmatpush1.bf16.msra.mxu1 %v665_v16  ;;  %v832_v44 = vrot.slane %v84_v41, %v88_v39  ;;  %v834_v45 = vrot.slane %v84_v41, %v96_v40  ;;  %v836_v46 = vrot.slane %v84_v41, %v92_v42  ;;  %p739_p2 = scmp.ne.s32.totalorder %s554_s13, %s738_s14  ;;  %p744_p4 = scmp.lt.s32.totalorder %s738_s14, %s738_s14 }
  0x37   :  { %298 = vmatprep.subr.bf16.mxu0 %v666_v17  ;;  %371 = vmatprep.subr.bf16.mxu1 %v668_v18  ;;  %v838_v47 = vrot.slane %v84_v41, %v100_v43 }
  0x38   :  { %p745_p5 = por %p744_p4, %p743_p3 }
  0x3a   :  { %299 = vmatpush1.bf16.msra.mxu0 %v670_v19  ;;  %372 = vmatpush1.bf16.msra.mxu1 %v671_v20  ;;  %p746_p6 = pnand %p745_p5, %p739_p2 }
  0x3b   :  { %300 = vmatprep.subr.bf16.mxu0 %v672_v21  ;;  %373 = vmatprep.subr.bf16.mxu1 %v674_v22 }
  0x3e   :  { %301 = vmatpush1.bf16.msra.mxu0 %v676_v23  ;;  %374 = vmatpush1.bf16.msra.mxu1 %v677_v24 }
  0x3f   :  { %302 = vmatprep.subr.bf16.mxu0 %v678_v25  ;;  %375 = vmatprep.subr.bf16.mxu1 %v680_v26 }
  0x42   :  { %303 = vmatpush1.bf16.msra.mxu0 %v682_v27  ;;  %376 = vmatpush1.bf16.msra.mxu1 %v683_v28 }
  0x43   :  { %304 = vmatprep.subr.bf16.mxu0 %v684_v29  ;;  %377 = vmatprep.subr.bf16.mxu1 %v686_v30 }
  0x46   :  { %305 = vmatpush1.bf16.msra.mxu0 %v688_v31  ;;  %378 = vmatpush1.bf16.msra.mxu1 %v689_v32 }
  0x49   :  { %323 = vmatmul.mubr.bf16.vlgmr.msra.gmra.mrb[0].mxu0 %v690_v33  ;;  %396 = vmatmul.mubr.bf16.vlgmr.msra.gmra.mrb[0].mxu1 %v690_v33 }
  0x4a   :  { %332 = vmatprep.mubr.bf16.mxu0 %v772_v0  ;;  %405 = vmatprep.mubr.bf16.mxu1 %v772_v0 }
  0x51   :  { %333 = vmatmul.mubr.bf16.gmra.mrb[4].mxu0 %v691_v34  ;;  %406 = vmatmul.mubr.bf16.gmra.mrb[4].mxu1 %v691_v34 }
  0x52   :  { %342 = vmatprep.mubr.bf16.mxu0 %v772_v0  ;;  %415 = vmatprep.mubr.bf16.mxu1 %v772_v0 }
  0x59   :  { %343 = vmatmul.mubr.bf16.gmra.mrb[8].mxu0 %v692_v35  ;;  %416 = vmatmul.mubr.bf16.gmra.mrb[8].mxu1 %v692_v35 }
  0x5a   :  { %352 = vmatprep.mubr.bf16.mxu0 %v772_v0  ;;  %425 = vmatprep.mubr.bf16.mxu1 %v772_v0 }
  0x61   :  { %353 = vmatmul.mubr.bf16.gmra.mrb[12].mxu0 %v693_v36  ;;  %426 = vmatmul.mubr.bf16.gmra.mrb[12].mxu1 %v693_v36 }
 0x11c   :  { %v324_v48 = vpop.f32.mrb[0].mxu0  ;;  %v397_v49 = vpop.f32.mrb[0].mxu1 }
 0x11d   :  { %v325_v50 = vadd.f32 %v324_v48, %v832_v44  ;;  %v398_v51 = vadd.f32 %v397_v49, %v834_v45  ;;  %v326_v52 = vpop.f32.mrb[1].mxu0  ;;  %v399_v53 = vpop.f32.mrb[1].mxu1 }
 0x11e   :  { %v327_v54 = vadd.f32 %v326_v52, %v836_v46  ;;  %v400_v55 = vadd.f32 %v399_v53, %v838_v47  ;;  %v328_v56 = vpop.f32.mrb[2].mxu0  ;;  %v401_v57 = vpop.f32.mrb[2].mxu1 }
 0x11f   :  { %v329_v58 = vadd.f32 %v328_v56, %v832_v44  ;;  %v402_v59 = vadd.f32 %v401_v57, %v834_v45  ;;  %v330_v60 = vpop.f32.mrb[3].mxu0  ;;  %v403_v61 = vpop.f32.mrb[3].mxu1 }
 0x120   :  { %v618_v62 = vpack.c.bf16 %v327_v54, %v325_v50  ;;  %v619_v63 = vpack.c.bf16 %v400_v55, %v398_v51  ;;  %v331_v0 = vadd.f32 %v330_v60, %v836_v46  ;;  %v404_v1 = vadd.f32 %v403_v61, %v838_v47 }
 0x122   :  { %532 = vst [vmem:[#allocation7] sm:$0xff] %v618_v62  ;;  %533 = vst [vmem:[#allocation7 + $0x8] sm:$0xff] %v619_v63  ;;  %v620_v2 = vpack.c.bf16 %v331_v0, %v329_v58  ;;  %v621_v3 = vpack.c.bf16 %v404_v1, %v402_v59 }
 0x124   :  { %534 = vst [vmem:[#allocation7 + $0x10] sm:$0xff] %v620_v2  ;;  %535 = vst [vmem:[#allocation7 + $0x18] sm:$0xff] %v621_v3  ;;  %v334_v4 = vpop.f32.mrb[4].mxu0  ;;  %v407_v5 = vpop.f32.mrb[4].mxu1 }
 0x125   :  { %v335_v6 = vadd.f32 %v334_v4, %v832_v44  ;;  %v408_v7 = vadd.f32 %v407_v5, %v834_v45  ;;  %v336_v8 = vpop.f32.mrb[5].mxu0  ;;  %v409_v9 = vpop.f32.mrb[5].mxu1 }
 0x126   :  { %v337_v10 = vadd.f32 %v336_v8, %v836_v46  ;;  %v410_v11 = vadd.f32 %v409_v9, %v838_v47  ;;  %v338_v12 = vpop.f32.mrb[6].mxu0  ;;  %v411_v13 = vpop.f32.mrb[6].mxu1 }
 0x127   :  { %v339_v14 = vadd.f32 %v338_v12, %v832_v44  ;;  %v412_v15 = vadd.f32 %v411_v13, %v834_v45  ;;  %v340_v16 = vpop.f32.mrb[7].mxu0  ;;  %v413_v17 = vpop.f32.mrb[7].mxu1 }
 0x128   :  { %v622_v18 = vpack.c.bf16 %v337_v10, %v335_v6  ;;  %v623_v19 = vpack.c.bf16 %v410_v11, %v408_v7  ;;  %v341_v20 = vadd.f32 %v340_v16, %v836_v46  ;;  %v414_v21 = vadd.f32 %v413_v17, %v838_v47 }
 0x12a   :  { %536 = vst [vmem:[#allocation7 + $0x20] sm:$0xff] %v622_v18  ;;  %537 = vst [vmem:[#allocation7 + $0x28] sm:$0xff] %v623_v19  ;;  %v624_v22 = vpack.c.bf16 %v341_v20, %v339_v14  ;;  %v625_v23 = vpack.c.bf16 %v414_v21, %v412_v15 }
 0x12c   :  { %538 = vst [vmem:[#allocation7 + $0x30] sm:$0xff] %v624_v22  ;;  %539 = vst [vmem:[#allocation7 + $0x38] sm:$0xff] %v625_v23  ;;  %v344_v24 = vpop.f32.mrb[8].mxu0  ;;  %v417_v25 = vpop.f32.mrb[8].mxu1 }
 0x12d   :  { %v345_v26 = vadd.f32 %v344_v24, %v832_v44  ;;  %v418_v27 = vadd.f32 %v417_v25, %v834_v45  ;;  %v346_v28 = vpop.f32.mrb[9].mxu0  ;;  %v419_v29 = vpop.f32.mrb[9].mxu1 }
 0x12e   :  { %v347_v30 = vadd.f32 %v346_v28, %v836_v46  ;;  %v420_v31 = vadd.f32 %v419_v29, %v838_v47  ;;  %v348_v32 = vpop.f32.mrb[10].mxu0  ;;  %v421_v33 = vpop.f32.mrb[10].mxu1 }
 0x12f   :  { %v349_v34 = vadd.f32 %v348_v32, %v832_v44  ;;  %v422_v35 = vadd.f32 %v421_v33, %v834_v45  ;;  %v350_v36 = vpop.f32.mrb[11].mxu0  ;;  %v423_v37 = vpop.f32.mrb[11].mxu1 }
 0x130   :  { %v626_v38 = vpack.c.bf16 %v347_v30, %v345_v26  ;;  %v627_v39 = vpack.c.bf16 %v420_v31, %v418_v27  ;;  %v351_v40 = vadd.f32 %v350_v36, %v836_v46  ;;  %v424_v41 = vadd.f32 %v423_v37, %v838_v47 }
 0x132   :  { %540 = vst [vmem:[#allocation7 + $0x40] sm:$0xff] %v626_v38  ;;  %541 = vst [vmem:[#allocation7 + $0x48] sm:$0xff] %v627_v39  ;;  %v628_v42 = vpack.c.bf16 %v351_v40, %v349_v34  ;;  %v629_v43 = vpack.c.bf16 %v424_v41, %v422_v35 }
 0x134   :  { %542 = vst [vmem:[#allocation7 + $0x50] sm:$0xff] %v628_v42  ;;  %543 = vst [vmem:[#allocation7 + $0x58] sm:$0xff] %v629_v43  ;;  %v354_v48 = vpop.f32.mrb[12].mxu0  ;;  %v427_v49 = vpop.f32.mrb[12].mxu1 }
 0x135   :  { %v355_v50 = vadd.f32 %v354_v48, %v832_v44  ;;  %v428_v51 = vadd.f32 %v427_v49, %v834_v45  ;;  %v356_v52 = vpop.f32.mrb[13].mxu0  ;;  %v429_v53 = vpop.f32.mrb[13].mxu1 }
 0x136   :  { %v357_v54 = vadd.f32 %v356_v52, %v836_v46  ;;  %v430_v55 = vadd.f32 %v429_v53, %v838_v47  ;;  %v358_v56 = vpop.f32.mrb[14].mxu0  ;;  %v431_v57 = vpop.f32.mrb[14].mxu1 }
 0x137   :  { %v359_v58 = vadd.f32 %v358_v56, %v832_v44  ;;  %v432_v59 = vadd.f32 %v431_v57, %v834_v45  ;;  %v360_v60 = vpop.f32.mrb[15].mxu0  ;;  %v433_v61 = vpop.f32.mrb[15].mxu1 }
 0x138   :  { %v630_v62 = vpack.c.bf16 %v357_v54, %v355_v50  ;;  %v631_v63 = vpack.c.bf16 %v430_v55, %v428_v51  ;;  %v361_v0 = vadd.f32 %v360_v60, %v836_v46  ;;  %v434_v1 = vadd.f32 %v433_v61, %v838_v47 }
 0x13a   :  { %544 = vst [vmem:[#allocation7 + $0x60] sm:$0xff] %v630_v62  ;;  %545 = vst [vmem:[#allocation7 + $0x68] sm:$0xff] %v631_v63  ;;  %v632_v2 = vpack.c.bf16 %v361_v0, %v359_v58  ;;  %v633_v3 = vpack.c.bf16 %v434_v1, %v432_v59 }
 0x13c   :  { %546 = vst [vmem:[#allocation7 + $0x70] sm:$0xff] %v632_v2  ;;  %547 = vst [vmem:[#allocation7 + $0x78] sm:$0xff] %v633_v3 }
 0x13d   :  { %749 = shalt.err (!%p746_p6)
}
 0x13e   :  { %s750_s17 = scalar_lea.hbm %s890_s3, 2048 }
 0x13f   :  { %p751_p7 = scmp.ne.s32.totalorder %s890_s3, %s750_s17  ;;  %p754_p8 = scmp.lt.u32.totalorder %s750_s17, %s890_s3 }
 0x141   :  { %p756_p9 = pnand %p754_p8, %p751_p7 }
 0x143   :  { %759 = shalt.err (!%p756_p9)
}
 0x144   :  { %559 = dma.vmem_to_hbm [thread:$0]  %s554_s13, 2048, %s890_s3, [#allocation4], %s770_s0, %s770_s0, %s771_s9  }
 0x145   :  { %764 = dma.done.wait [#allocation4], 2048  }
 0x146   :  { %765 = vsyncadd [#allocation4], 4294965248 }
 0x147   :  { %563 = vsyncpa [#allocation3], 1 }
 0x148   :  { %564 = vsyncpa [#allocation6], 1 }
 0x149   :  { %565 = vsyncpa [#allocation4], 1 }

</bundles_post_ra>
